<compile_context>
chip_gen: v5e
topology: v5e:2x2
jax: 0.10.0
libtpu: 0.0.40
codegen_flags: <defaults>
</compile_context>

<pallas_src>
import numpy as np

import jax
import jax.numpy as jnp
from jax.experimental import pallas as pl
from jax.experimental.pallas import tpu as pltpu


def _round_up(x, m):
    return (x + m - 1) // m * m


def _pick_gg_tile(ggp, target=1024):
    """Largest 128-multiple tile <= target that divides the padded GG; prefer
    >= 2 tiles along GG so the pipeline / megacore has something to overlap."""
    tile = min(target, ggp)
    if tile == ggp and ggp >= 256:
        tile = ggp // 2
    tile = max(128, (tile // 128) * 128)
    while ggp % tile != 0:
        tile -= 128
    return tile


def _transform_tile(v, rc, off):
    """Elementwise YOLO transform of one (C, T) tile (all f32).

    rc columns: [sgn, use_exp, is_x, is_y, mul];  off rows: [grid_x, grid_y].
    One exp + one divide per element (EUP), everything else on the VPU.
    """
    sgn = rc[:, 0:1]        # +1 on w/h rows, -1 elsewhere
    use_exp = rc[:, 1:2]
    is_x = rc[:, 2:3]
    is_y = rc[:, 3:4]
    mul = rc[:, 4:5]

    e = jnp.exp(v * sgn)          # exp(v) on w/h rows, exp(-v) on sigmoid rows
    sig = 1.0 / (1.0 + e)         # == sigmoid(v) on the sigmoid rows
    # NOTE: keep this a select (not a blend) so inf from exp never makes NaN;
    # the (C,1) predicate broadcasts implicitly (no materialized full mask).
    f = jnp.where(use_exp > 0.5, e, sig)

    add = is_x * off[0:1, :] + is_y * off[1:2, :]   # grid offsets on x/y rows only
    return (f + add) * mul


def _detect_kernel_cgg(x_ref, rc_ref, off_ref, o_ref):
    # x_ref: (1, C, T)  rc_ref: (C, 5)  off_ref: (2, T)  o_ref: (1, C, T)
    v = x_ref[0].astype(jnp.float32)
    out = _transform_tile(v, rc_ref[...], off_ref[...])
    o_ref[0] = out.astype(o_ref.dtype)


def _detect_kernel_ggc(x_ref, rc_ref, off_ref, o_ref):
    # Same as above but emits the detection-ordered layout: o_ref: (1, T, C).
    v = x_ref[0].astype(jnp.float32)
    out = _transform_tile(v, rc_ref[...], off_ref[...])
    o_ref[0] = jnp.transpose(out).astype(o_ref.dtype)   # (C, T) -> (T, C) on XLU


def detection_layer(x, inp_dim, anchors, num_classes, confidence=None):
    """x: (N, C, G, G) with C = len(anchors) * (5 + num_classes).

    Returns (N, G*G*len(anchors), 5 + num_classes), matching predict_transform.
    # TODO(synk): `confidence` is accepted for API parity with the PyTorch
    # DetectionLayer but (as in the reference predict_transform) is unused here;
    # confidence thresholding / NMS happens downstream in write_results.
    """
    n, c, h, w = x.shape
    assert h == w, "square feature map expected"
    g = h
    assert inp_dim % g == 0
    stride = inp_dim // g
    a = len(anchors)
    b = 5 + num_classes
    assert c == a * b, (c, a, b)
    gg = g * g
    out_dtype = x.dtype

    # Wide heads -> store transposed (GG, C) directly (lane-dense, no XLA
    # transpose pass).  Narrow heads (e.g. the 21-channel test) would be
    # lane-sparse in that layout, so keep the (C, GG) store there.
    transposed = c >= 128

    ggp = _round_up(gg, 128)                       # lane-dense GG
    cp = _round_up(c, 8) if transposed else c      # sublane-aligned C for the XLU transpose

    # ---- tiny per-channel / per-cell constants (host-side, static config) ----
    b_idx = np.arange(c) % b          # bbox-attribute index per channel
    a_idx = np.arange(c) // b         # anchor index per channel
    anchors_arr = np.asarray(anchors, dtype=np.float32)   # (A, 2)

    is_wh = (b_idx == 2) | (b_idx == 3)
    sgn = np.where(is_wh, 1.0, -1.0).astype(np.float32)
    use_exp = is_wh.astype(np.float32)
    is_x = (b_idx == 0).astype(np.float32)
    is_y = (b_idx == 1).astype(np.float32)
    mul = np.ones(c, dtype=np.float32)
    mul[(b_idx == 0) | (b_idx == 1)] = float(stride)     # (sigmoid + offset) * stride
    mul[b_idx == 2] = anchors_arr[a_idx[b_idx == 2], 0]  # exp * (aw/stride) * stride = exp * aw
    mul[b_idx == 3] = anchors_arr[a_idx[b_idx == 3], 1]  # exp * (ah/stride) * stride = exp * ah
    rc_np = np.stack([sgn, use_exp, is_x, is_y, mul], axis=1)        # (C, 5)
    if cp != c:   # harmless pad channels (sigmoid path, mul = 0); sliced off later
        pad_rows = np.zeros((cp - c, 5), dtype=np.float32)
        pad_rows[:, 0] = -1.0
        rc_np = np.concatenate([rc_np, pad_rows], axis=0)
    rc = jnp.asarray(rc_np)                                           # (Cp, 5)

    gidx = np.arange(ggp)
    off = jnp.asarray(
        np.stack([gidx % g, gidx // g], axis=0).astype(np.float32))   # (2, GGP)

    x_flat = x.reshape(n, c, gg)   # contiguous, no data movement
    if ggp != gg or cp != c:
        # TODO(synk): for heads where GG is not a 128-multiple (G=13/26/52) or C
        # is not an 8-multiple (C=255) this pad and the matching slice below are
        # extra XLA passes; fuse into producer/consumer if they show in profiles.
        x_flat = jnp.pad(x_flat, ((0, 0), (0, cp - c), (0, ggp - gg)))

    tile = _pick_gg_tile(ggp)
    grid = (n, ggp // tile)

    in_specs = [
        pl.BlockSpec((1, cp, tile), lambda i, j: (i, 0, j)),
        pl.BlockSpec((cp, 5), lambda i, j: (0, 0)),
        pl.BlockSpec((2, tile), lambda i, j: (0, j)),
    ]
    if transposed:
        kernel = _detect_kernel_ggc
        out_shape = jax.ShapeDtypeStruct((n, ggp, cp), out_dtype)
        out_specs = pl.BlockSpec((1, tile, cp), lambda i, j: (i, j, 0))
    else:
        kernel = _detect_kernel_cgg
        out_shape = jax.ShapeDtypeStruct((n, cp, ggp), out_dtype)
        out_specs = pl.BlockSpec((1, cp, tile), lambda i, j: (i, 0, j))

    y = pl.pallas_call(
        kernel,
        out_shape=out_shape,
        grid_spec=pltpu.PrefetchScalarGridSpec(
            num_scalar_prefetch=0,
            grid=grid,
            in_specs=in_specs,
            out_specs=out_specs,
        ),
        compiler_params=pltpu.CompilerParams(
            dimension_semantics=("parallel", "parallel"),
            vmem_limit_bytes=32 * 1024 * 1024,
        ),
    )(x_flat, rc, off)

    if transposed:
        if ggp != gg or cp != c:
            y = y[:, :gg, :c]
        # pure views: (N, GG, C) -> (N, GG, A, B) -> (N, GG*A, B)
        out = y.reshape(n, gg, a, b).reshape(n, gg * a, b)
    else:
        if ggp != gg:
            y = y[:, :, :gg]
        # XLA layout glue kept only for narrow C (lane-sparse transposed store).
        out = y.reshape(n, a, b, gg).transpose(0, 3, 1, 2).reshape(n, gg * a, b)
    return out


def _reference(x, inp_dim, anchors, num_classes):
    """Pure-JAX reference matching the PyTorch predict_transform exactly."""
    n, c, h, w = x.shape
    g = h
    stride = inp_dim // g
    a = len(anchors)
    b = 5 + num_classes
    gg = g * g

    p = x.reshape(n, c, gg).transpose(0, 2, 1).reshape(n, gg * a, b)
    p = p.astype(jnp.float32)

    anc = jnp.asarray(anchors, jnp.float32) / stride          # (A, 2)

    def sig(t):
        return 1.0 / (1.0 + jnp.exp(-t))

    gidx = jnp.arange(gg)
    x_off = (gidx % g).astype(jnp.float32)
    y_off = (gidx // g).astype(jnp.float32)
    xy_off = jnp.stack([x_off, y_off], axis=-1)               # (GG, 2)
    xy_off = jnp.repeat(xy_off, a, axis=0)[None]              # (1, GG*A, 2)
    anc_rep = jnp.tile(anc, (gg, 1))[None]                    # (1, GG*A, 2)

    box_xy = (sig(p[..., 0:2]) + xy_off) * stride
    box_wh = jnp.exp(p[..., 2:4]) * anc_rep * stride
    obj = sig(p[..., 4:5])
    cls = sig(p[..., 5:])
    return jnp.concatenate([box_xy, box_wh, obj, cls], axis=-1)


if __name__ == "__main__":
    key = jax.random.PRNGKey(0)

    # Config 1: small smoke test (narrow head, C = 3*(5+2) = 21 -> (C, GG) path).
    # Config 2: real-head channel count (3 anchors, 80 classes -> C = 255) on a
    #           tiny 8x8 grid -> exercises the transposed (GG, C) store path plus
    #           the GG (64->128) and C (255->256) padding.
    configs = [
        dict(n=2, g=16, num_classes=2, inp_dim=64,
             anchors=[(10.0, 13.0), (16.0, 30.0), (33.0, 23.0)]),
        dict(n=1, g=8, num_classes=80, inp_dim=256,
             anchors=[(116.0, 90.0), (156.0, 198.0), (373.0, 326.0)]),
    ]

    for cfg_i, cfg in enumerate(configs):
        n, g = cfg["n"], cfg["g"]
        num_classes, inp_dim, anchors = cfg["num_classes"], cfg["inp_dim"], cfg["anchors"]
        a = len(anchors)
        c = a * (5 + num_classes)

        key, sub = jax.random.split(key)
        x = jax.random.normal(sub, (n, c, g, g), dtype=jnp.float32)

        out = detection_layer(x, inp_dim, anchors, num_classes, confidence=0.5)
        out = jax.block_until_ready(out)

        ref = _reference(x, inp_dim, anchors, num_classes)
        assert out.shape == ref.shape == (n, g * g * a, 5 + num_classes), (
            cfg_i, out.shape, ref.shape)
        assert jnp.allclose(out, ref, rtol=1e-5, atol=1e-4), (
            cfg_i, float(jnp.max(jnp.abs(out - ref))))

    print("KERNEL_OK")
</pallas_src>

<mosaic_0001>
module attributes {stable_mosaic.version = 11 : i64} {
  func.func @_detect_kernel_cgg(%arg0: i32, %arg1: i32, %arg2: memref<1x21x128xf32, #tpu.memory_space<vmem>>, %arg3: memref<21x5xf32, #tpu.memory_space<vmem>>, %arg4: memref<2x128xf32, #tpu.memory_space<vmem>>, %arg5: memref<1x21x128xf32, #tpu.memory_space<vmem>>) attributes {dimension_semantics = [#tpu.dimension_semantics<parallel>, #tpu.dimension_semantics<parallel>], iteration_bounds = array<i64: 2, 2>, scalar_prefetch = 0 : i64, scratch_operands = 0 : i64, tpu.core_type = #tpu.core_type<tc>, window_params = [{transform_indices = @transform_0, window_bounds = array<i64: 1, 21, 128>}, {pipeline_mode = #tpu.pipeline_mode<synchronous>, transform_indices = @transform_1, window_bounds = array<i64: 21, 5>}, {transform_indices = @transform_2, window_bounds = array<i64: 2, 128>}, {transform_indices = @transform_3, window_bounds = array<i64: 1, 21, 128>}]} {
    %c0 = arith.constant 0 : index
    %c0_0 = arith.constant 0 : index
    %c0_1 = arith.constant 0 : index
    %0 = vector.load %arg2[%c0, %c0_0, %c0_1] : memref<1x21x128xf32, #tpu.memory_space<vmem>>, vector<1x21x128xf32>
    %1 = vector.shape_cast %0 : vector<1x21x128xf32> to vector<21x128xf32>
    %c0_2 = arith.constant 0 : index
    %c0_3 = arith.constant 0 : index
    %2 = vector.load %arg3[%c0_2, %c0_3] : memref<21x5xf32, #tpu.memory_space<vmem>>, vector<21x5xf32>
    %c0_4 = arith.constant 0 : index
    %c0_5 = arith.constant 0 : index
    %3 = vector.load %arg4[%c0_4, %c0_5] : memref<2x128xf32, #tpu.memory_space<vmem>>, vector<2x128xf32>
    %4 = vector.extract_strided_slice %2 {offsets = [0, 0], sizes = [21, 1], strides = [1, 1]} : vector<21x5xf32> to vector<21x1xf32>
    %5 = vector.extract_strided_slice %2 {offsets = [0, 1], sizes = [21, 1], strides = [1, 1]} : vector<21x5xf32> to vector<21x1xf32>
    %6 = vector.extract_strided_slice %2 {offsets = [0, 2], sizes = [21, 1], strides = [1, 1]} : vector<21x5xf32> to vector<21x1xf32>
    %7 = vector.extract_strided_slice %2 {offsets = [0, 3], sizes = [21, 1], strides = [1, 1]} : vector<21x5xf32> to vector<21x1xf32>
    %8 = vector.extract_strided_slice %2 {offsets = [0, 4], sizes = [21, 1], strides = [1, 1]} : vector<21x5xf32> to vector<21x1xf32>
    %9 = vector.broadcast %4 : vector<21x1xf32> to vector<21x128xf32>
    %10 = arith.mulf %1, %9 : vector<21x128xf32>
    %11 = math.exp %10 : vector<21x128xf32>
    %cst = arith.constant 1.000000e+00 : f32
    %12 = vector.broadcast %cst : f32 to vector<21x128xf32>
    %13 = arith.addf %12, %11 : vector<21x128xf32>
    %cst_6 = arith.constant 1.000000e+00 : f32
    %14 = vector.broadcast %cst_6 : f32 to vector<21x128xf32>
    %15 = arith.divf %14, %13 : vector<21x128xf32>
    %cst_7 = arith.constant 5.000000e-01 : f32
    %16 = vector.broadcast %cst_7 : f32 to vector<21x1xf32>
    %17 = arith.cmpf ogt, %5, %16 : vector<21x1xf32>
    %18 = vector.shape_cast %17 : vector<21x1xi1> to vector<21x1xi1>
    %19 = vector.broadcast %18 : vector<21x1xi1> to vector<21x128xi1>
    %20 = arith.select %19, %11, %15 : vector<21x128xi1>, vector<21x128xf32>
    %21 = vector.extract_strided_slice %3 {offsets = [0, 0], sizes = [1, 128], strides = [1, 1]} : vector<2x128xf32> to vector<1x128xf32>
    %22 = vector.broadcast %6 : vector<21x1xf32> to vector<21x128xf32>
    %23 = vector.broadcast %21 : vector<1x128xf32> to vector<21x128xf32>
    %24 = arith.mulf %22, %23 : vector<21x128xf32>
    %25 = vector.extract_strided_slice %3 {offsets = [1, 0], sizes = [1, 128], strides = [1, 1]} : vector<2x128xf32> to vector<1x128xf32>
    %26 = vector.broadcast %7 : vector<21x1xf32> to vector<21x128xf32>
    %27 = vector.broadcast %25 : vector<1x128xf32> to vector<21x128xf32>
    %28 = arith.mulf %26, %27 : vector<21x128xf32>
    %29 = arith.addf %24, %28 : vector<21x128xf32>
    %30 = arith.addf %20, %29 : vector<21x128xf32>
    %31 = vector.broadcast %8 : vector<21x1xf32> to vector<21x128xf32>
    %32 = arith.mulf %30, %31 : vector<21x128xf32>
    %c0_8 = arith.constant 0 : index
    %c0_9 = arith.constant 0 : index
    %c0_10 = arith.constant 0 : index
    %33 = vector.load %arg5[%c0_8, %c0_9, %c0_10] : memref<1x21x128xf32, #tpu.memory_space<vmem>>, vector<1x21x128xf32>
    %34 = vector.shape_cast %33 : vector<1x21x128xf32> to vector<21x128xf32>
    %35 = vector.shape_cast %32 : vector<21x128xf32> to vector<1x21x128xf32>
    tpu.vector_store %arg5[%c0_8, %c0_9, %c0_10], %35 {strides = array<i32>} : memref<1x21x128xf32, #tpu.memory_space<vmem>>, vector<1x21x128xf32>,
    return
  }
  func.func @transform_0(%arg0: i32, %arg1: i32) -> (i32, i32, i32) {
    %c0_i32 = arith.constant 0 : i32
    %c0_i32_0 = arith.constant 0 : i32
    return %arg0, %c0_i32, %arg1 : i32, i32, i32
  }
  func.func @transform_1(%arg0: i32, %arg1: i32) -> (i32, i32) {
    %c0_i32 = arith.constant 0 : i32
    %c0_i32_0 = arith.constant 0 : i32
    %c0_i32_1 = arith.constant 0 : i32
    return %c0_i32, %c0_i32_0 : i32, i32
  }
  func.func @transform_2(%arg0: i32, %arg1: i32) -> (i32, i32) {
    %c0_i32 = arith.constant 0 : i32
    %c0_i32_0 = arith.constant 0 : i32
    return %c0_i32, %arg1 : i32, i32
  }
  func.func @transform_3(%arg0: i32, %arg1: i32) -> (i32, i32, i32) {
    %c0_i32 = arith.constant 0 : i32
    %c0_i32_0 = arith.constant 0 : i32
    return %arg0, %c0_i32, %arg1 : i32, i32, i32
  }
}

</mosaic_0001>

<bundles_post_ra>
// kernel: tpu_custom_call.1
= control target key start
LH: loop header
LB: loop body
LE: loop exit
PB: predicated region body
PF: predicated region fallthrough
CT: control target
= control target key end

     0   :  { %s716_s12 = smov 0   ;;  %s718_s13 = smov 0   ;;  %s857_s0 = inlined_call_operand.vmem [shape: f32[2,21,256], index: 0, kind: input, shape index: {}]   ;;  %s858_s1 = inlined_call_operand.vmem [shape: f32[21,5], index: 1, kind: input, shape index: {}]   ;;  %s859_s2 = inlined_call_operand.vmem [shape: f32[2,256], index: 2, kind: input, shape index: {}]   ;;  %s860_s3 = inlined_call_operand.vmem [shape: f32[2,21,256], index: 3, kind: output, shape index: {}]  }
   0x1   :  { %s720_s14 = smov 0   ;;  %s722_s15 = smov 0  }
   0x2   :  { %s724_s16 = smov 0   ;;  %s726_s17 = smov 0  }
   0x3   :  { %s728_s18 = smov 0  }
   0x4 LB: > { %s22_s19 = sadd.s32 1, %s681_s16  ;;  %s25_s20 = sadd.s32 1, %s685_s17  ;;  %s689_s18 = sphi %s728_s18, %s13_s18   ;;  %s685_s17 = sphi %s726_s17, %s869_s17   ;;  %s681_s16 = sphi %s724_s16, %s868_s16   ;;  %s677_s15 = sphi %s722_s15, %s867_s15   ;;  %s673_s14 = sphi %s720_s14, %s866_s14   ;;  %s669_s13 = sphi %s718_s13, %s865_s13   ;;  %s665_s12 = sphi %s716_s12, %s864_s12  }
   0x5   : > { %p23_p0 = scmp.ge.s32.totalorder %s22_s19, 2  ;;  %s535_s21 = sadd.s32 4294967295, %s689_s18  }
   0x6   : > { %p41_p1 = scmp.ne.s32.totalorder %s669_s13, %s665_s12  ;;  %p42_p2 = scmp.eq.s32.totalorder %s689_s18, 0 }
   0x7   : > { %s871_s19 = smov (%p23_p0, %s22_s19), 0  ;;  %s873_s20 = smov (!%p23_p0, %s25_s20), %s685_s17 }
   0x8   : > { %p27_p3 = scmp.ge.s32.totalorder %s873_s20, 2  ;;  %p120_p4 = scmp.eq.s32.totalorder %s535_s21, 3 }
   0x9   : > { %s30_s22 = ssub.s32 %s681_s16, %s871_s19  ;;  %p43_p5 = por %p42_p2, %p41_p1 }
   0xa   : > { %s875_s20 = smov (%p27_p3, %s873_s20), 0  ;;  %p764_p6 = por %p120_p4, %p41_p1 }
   0xb   : > { %s29_s24 = ssub.s32 %s685_s17, %s875_s20  ;;  %s34_s26 = sadd.s32 1, %s669_s13 }
   0xc   : > { %s31_s25 = sor.u32 %s30_s22, %s29_s24  ;;  %p538_p8 = scmp.ge.s32.totalorder %s689_s18, 4 }
   0xd   : > { %p32_p7 = scmp.eq.s32.totalorder %s31_s25, 0 }
   0xe   : > { %145 = sbr.rel (%p538_p8) target bundleno = 29 (0x1d), region = 20 }
   0xf   : > { %s772_s27 = scalar_select %p32_p7, %s669_s13, %s34_s26  }
  0x13   : > { %148 = sbr.rel (!%p43_p5) target bundleno = 29 (0x1d), region = 24  ;;  %s150_s28 = sand.u32 (%p43_p5), 1, %s669_s13  }
  0x14   : > { %s546_s29 = smul.u32 (%p43_p5), 6, %s685_s17 }
  0x15   : > { %s545_s30 = smul.u32 (%p43_p5), 24, %s150_s28 }
  0x16   : > { %s154_s4 = sadd.s32 (%p43_p5), %s681_s16, %s546_s29 }
  0x17   : > { %s539_s5 = sshll.u32 (%p43_p5), %s154_s4, 3  ;;  %s152_s9 = scalar_lea.vmem (%p43_p5), [#allocation2], %s545_s30 }
  0x18   : > { %s156_s8 = scalar_lea.vmem %s857_s0, %s539_s5 }
  0x19   : > { %v189_v0 = vld [vmem:[%s156_s8] sm:$0xff]  ;;  %v191_v1 = vld [vmem:[%s156_s8 + $0x10] sm:$0xff] }
  0x1a   : > { %v193_v2 = vld [vmem:[%s156_s8 + $0x20] sm:$0xff]  ;;  %190 = vst [vmem:[%s152_s9] sm:$0xff] %v189_v0 }
  0x1b   : > { %192 = vst [vmem:[%s152_s9 + $0x8] sm:$0xff] %v191_v1 }
  0x1c   : > { %194 = vst [vmem:[%s152_s9 + $0x10] sm:$0xff] %v193_v2 }
  0x1d PF: > { %p540_p9 = scmp.ge.s32.totalorder %s689_s18, 1  ;;  %p206_p10 = scmp.lt.s32.totalorder %s689_s18, 5 }
  0x1f   : > { %p207_p11 = pnand %p540_p9, %p206_p10 }
  0x20   : > { %s213_s26 = sand.u32 (!%p207_p11), 1, %s665_s12   ;;  %p239_p12 = scmp.lt.s32.totalorder (!%p207_p11), %s673_s14, 1 }
  0x21   : > { %210 = sbr.rel (%p207_p11) target bundleno = 210 (0xd2), region = 66 }
  0x22   : > { %s793_s28 = smul.u32 (!%p207_p11), 24, %s213_s26 }
  0x24   : > { %s215_s29 = scalar_lea.vmem (!%p207_p11), [#allocation2], %s793_s28  ;;  %s238_s7 = scalar_lea.vmem (!%p207_p11), [#allocation3], %s793_s28 }
  0x26   : > { %v248_v3 = vld [vmem:[%s858_s1 + $0x10] sm:$0x1f]  ;;  %v246_v4 = vld [vmem:[%s858_s1] sm:$0xff]  ;;  %v247_v5 = vld [vmem:[%s858_s1 + $0x8] sm:$0xff]  ;;  %v691_v6 = vmov 0   ;;  %v692_v8 = vmov 1  }
  0x27   : > { %611 = vset.pattern.permute.xlu1 %v691_v6  ;;  %610 = vset.pattern.permute.xlu0 %v691_v6  ;;  %vm323_vm0 = vcmp.gt.f32.partialorder %v247_v5, 0.5  ;;  %vm322_vm1 = vcmp.gt.f32.partialorder %v246_v4, 0.5  ;;  %vm324_vm2 = vcmp.gt.f32.partialorder %v248_v3, 0.5  ;;  %v693_v11 = vmov 2   ;;  %v245_v14 = vld [vmem:[%s215_s29 + $0x10] sm:$0x1f] }
  0x28   : > { %262 = vperm.xlu1 %611, %v248_v3   ;;  %252 = vperm.xlu0 %610, %v246_v4   ;;  %v326_v7 = vsel %vm323_vm0, 1, %v691_v6  ;;  %v325_v9 = vsel %vm322_vm1, 1, %v691_v6  ;;  %v327_v10 = vsel %vm324_vm2, 1, %v691_v6  ;;  %v694_v12 = vmov 3   ;;  %v243_v15 = vld [vmem:[%s215_s29] sm:$0xff]  ;;  %v244_v23 = vld [vmem:[%s215_s29 + $0x8] sm:$0xff] }
  0x29   : > { %613 = vset.pattern.permute.xlu2 %v692_v8  ;;  %v695_v13 = vmov 4   ;;  %s240_s12 = scalar_select %p239_p12, %s673_s14, 1 }
  0x2a   : > { %332 = vperm.xlu2 %613, %v326_v7   ;;  %s548_s8 = smul.u32 (%p764_p6), 6, %s677_s15 }
  0x2b   : > { %s541_s30 = sshll.u32 %s240_s12, 1 }
  0x2c   : > { %s242_s6 = scalar_lea.vmem %s859_s2, %s541_s30  ;;  %s407_s9 = sadd.s32 (%p764_p6), %s673_s14, %s548_s8 }
  0x2d   : > { %v249_v41 = vld [vmem:[%s242_s6] sm:$0x3]  ;;  %s542_s10 = sshll.u32 (%p764_p6), %s407_s9, 3 }
  0x2e   : > { %v355_v46 = vperm.slane %v249_v41, 0  ;;  %v371_v47 = vperm.slane %v249_v41, 1  ;;  %s409_s22 = scalar_lea.vmem (%p764_p6), %s860_s3, %s542_s10 }
  0x30   : > { %612 = vset.pattern.permute.xlu1 %v692_v8  ;;  %257 = vperm.xlu0 %610, %v247_v5  }
  0x31   : > { %329 = vperm.xlu1 %612, %v325_v9  }
  0x32   : > { %335 = vperm.xlu2 %613, %v327_v10  }
  0x38   : > { %614 = vset.pattern.permute.xlu0 %v693_v11 }
  0x39   : > { %344 = vperm.xlu0 %614, %v246_v4   ;;  %615 = vset.pattern.permute.xlu1 %v693_v11 }
  0x3a   : > { %348 = vperm.xlu1 %615, %v247_v5   ;;  %616 = vset.pattern.permute.xlu2 %v693_v11 }
  0x3b   : > { %352 = vperm.xlu2 %616, %v248_v3  }
  0x41   : > { %619 = vset.pattern.permute.xlu0 %v694_v12 }
  0x42   : > { %368 = vperm.xlu0 %619, %v248_v3   ;;  %617 = vset.pattern.permute.xlu1 %v694_v12 }
  0x43   : > { %360 = vperm.xlu1 %617, %v246_v4   ;;  %618 = vset.pattern.permute.xlu2 %v694_v12 }
  0x44   : > { %364 = vperm.xlu2 %618, %v247_v5  }
  0x4a   : > { %622 = vset.pattern.permute.xlu0 %v695_v13 }
  0x4b   : > { %620 = vset.pattern.permute.xlu1 %v695_v13 }
  0x4c   : > { %382 = vperm.xlu1 %620, %v246_v4   ;;  %621 = vset.pattern.permute.xlu2 %v695_v13 }
  0x4d   : > { %386 = vperm.xlu2 %621, %v247_v5  }
  0x54   : > { %390 = vperm.xlu1 %620, %v248_v3  }
  0x84   : > { %v796_v18 = vpop.permute.xlu2 %332 }
  0x85   : > { %vm338_vm0 = vcmp.eq.s32.totalorder %v796_v18, 1 }
  0x8c   : > { %v801_v28 = vpop.permute.xlu2 %335 }
  0x8d   : > { %vm339_vm1 = vcmp.eq.s32.totalorder %v801_v28, 1 }
  0x95   : > { %v353_v39 = vpop.permute.xlu2 %352 }
  0x96   : > { %v358_v6 = vmul.f32 %v355_v46, %v353_v39 }
  0x9a   : > { %v263_v16 = vpop.permute.xlu1 %262  ;;  %v253_v17 = vpop.permute.xlu0 %252 }
  0x9b   : > { %v267_v19 = vmul.f32 %v263_v16, %v245_v14  ;;  %v265_v20 = vmul.f32 %v253_v17, %v243_v15 }
  0x9d   : > { %v272_v21 = vmul.f32 1.442695, %v267_v19  ;;  %v268_v22 = vmul.f32 1.442695, %v265_v20 }
  0x9e   : > { %v365_v62 = vpop.permute.xlu2 %364 }
  0x9f   : > { %623 = vpow2.f32 %v272_v21  ;;  %v373_v11 = vmul.f32 %v371_v47, %v365_v62 }
  0xa0   : > { %625 = vpow2.f32 %v268_v22 }
  0xa2   : > { %v258_v24 = vpop.permute.xlu0 %257 }
  0xa3   : > { %v266_v25 = vmul.f32 %v258_v24, %v244_v23  ;;  %v330_v26 = vpop.permute.xlu1 %329 }
  0xa4   : > { %vm337_vm8 = vcmp.eq.s32.totalorder %v330_v26, 1 }
  0xa5   : > { %v799_v27 = vpop.eup %623  ;;  %v270_v29 = vmul.f32 1.442695, %v266_v25 }
  0xa6   : > { %v626_v30 = vpop.eup %625  ;;  %v804_v31 = vadd.f32 1.0, %v799_v27 }
  0xa7   : > { %v274_v32 = vadd.f32 1.0, %v626_v30  ;;  %627 = vpow2.f32 %v270_v29  ;;  %v387_v25 = vpop.permute.xlu2 %386 }
  0xa8   : > { %629 = vrcp.f32 %v804_v31  ;;  %v318_v56 = vand.u32 2147483648, %v804_v31  ;;  %vm312_vm9 = vweird.f32 %v804_v31  ;;  %v316_v1 = vand.u32 2147483647, %v804_v31 }
  0xa9   : > { %631 = vrcp.f32 %v274_v32  ;;  %v288_v45 = vand.u32 2147483648, %v274_v32  ;;  %v286_v50 = vand.u32 2147483647, %v274_v32  ;;  %vm282_vm4 = vweird.f32 %v274_v32 }
  0xaa   : > { %v319_v10 = vor.u32 1.1754944e-38, %v318_v56  ;;  %vm317_vm13 = vcmp.eq.f32.partialorder %v316_v1, 8.507059e+37 }
  0xab   : > { %v345_v42 = vpop.permute.xlu0 %344  ;;  %v289_v57 = vor.u32 1.1754944e-38, %v288_v45  ;;  %vm287_vm7 = vcmp.eq.f32.partialorder %v286_v50, 8.507059e+37 }
  0xac   : > { %v349_v33 = vpop.permute.xlu1 %348  ;;  %v356_v51 = vmul.f32 %v355_v46, %v345_v42 }
  0xad   : > { %v808_v34 = vpop.eup %627  ;;  %v357_v12 = vmul.f32 %v355_v46, %v349_v33 }
  0xae   : > { %v630_v35 = vpop.eup %629  ;;  %v275_v36 = vadd.f32 1.0, %v808_v34 }
  0xaf   : > { %v632_v37 = vpop.eup %631  ;;  %v308_v38 = vmul.f32 %v630_v35, %v804_v31  ;;  %vm313_vm6 = vweird.f32 %v630_v35  ;;  %v376_v22 = vadd.f32 %v373_v11, %v357_v12 }
  0xb0   : > { %633 = vrcp.f32 %v275_v36  ;;  %v278_v40 = vmul.f32 %v632_v37, %v274_v32  ;;  %vm283_vm3 = vweird.f32 %v632_v37  ;;  %v303_v4 = vand.u32 2147483648, %v275_v36  ;;  %vm818_vm10 = vmor %vm312_vm9, %vm313_vm6 }
  0xb1   : > { %v309_v43 = vsub.f32 1.0, %v308_v38  ;;  %vm284_vm5 = vmor %vm282_vm4, %vm283_vm3  ;;  %v301_v8 = vand.u32 2147483647, %v275_v36  ;;  %vm297_vm12 = vweird.f32 %v275_v36 }
  0xb2   : > { %v279_v44 = vsub.f32 1.0, %v278_v40  ;;  %v304_v17 = vor.u32 1.1754944e-38, %v303_v4 }
  0xb3   : > { %v310_v48 = vmul.f32 %v630_v35, %v309_v43  ;;  %vm302_vm15 = vcmp.eq.f32.partialorder %v301_v8, 8.507059e+37 }
  0xb4   : > { %v280_v49 = vmul.f32 %v632_v37, %v279_v44  ;;  %v369_v3 = vpop.permute.xlu0 %368 }
  0xb5   : > { %v361_v52 = vpop.permute.xlu1 %360  ;;  %v311_v59 = vadd.f32 %v630_v35, %v310_v48  ;;  %v374_v13 = vmul.f32 %v371_v47, %v369_v3 }
  0xb6   : > { %v634_v53 = vpop.eup %633  ;;  %v281_v54 = vadd.f32 %v632_v37, %v280_v49  ;;  %v372_v55 = vmul.f32 %v371_v47, %v361_v52 }
  0xb7   : > { %v293_v58 = vmul.f32 %v634_v53, %v275_v36  ;;  %vm298_vm11 = vweird.f32 %v634_v53  ;;  %v315_v9 = vsel %vm818_vm10, %v630_v35, %v311_v59  ;;  %v377_v24 = vadd.f32 %v374_v13, %v358_v6 }
  0xb8   : > { %v285_v60 = vsel %vm284_vm5, %v632_v37, %v281_v54  ;;  %v375_v63 = vadd.f32 %v372_v55, %v356_v51  ;;  %vm299_vm14 = vmor %vm297_vm12, %vm298_vm11  ;;  %v320_v19 = vsel %vm317_vm13, %v319_v10, %v315_v9 }
  0xb9   : > { %v290_v61 = vsel %vm287_vm7, %v289_v57, %v285_v60  ;;  %v294_v0 = vsub.f32 1.0, %v293_v58  ;;  %v342_v29 = vsel %vm339_vm1, %v799_v27, %v320_v19 }
  0xba   : > { %v340_v2 = vsel %vm337_vm8, %v626_v30, %v290_v61  ;;  %v380_v32 = vadd.f32 %v377_v24, %v342_v29 }
  0xbb   : > { %v295_v7 = vmul.f32 %v634_v53, %v294_v0  ;;  %v378_v14 = vadd.f32 %v375_v63, %v340_v2 }
  0xbd   : > { %v296_v15 = vadd.f32 %v634_v53, %v295_v7 }
  0xbe   : > { %v383_v16 = vpop.permute.xlu1 %382 }
  0xbf   : > { %v393_v20 = vmul.f32 %v383_v16, %v378_v14  ;;  %v300_v21 = vsel %vm299_vm14, %v634_v53, %v296_v15 }
  0xc0   : > { %v305_v23 = vsel %vm302_vm15, %v304_v17, %v300_v21 }
  0xc1   : > { %396 = vst [vmem:[%s238_s7] sm:$0xff] %v393_v20  ;;  %v341_v26 = vsel %vm338_vm0, %v808_v34, %v305_v23 }
  0xc2   : > { %v379_v30 = vadd.f32 %v376_v22, %v341_v26 }
  0xc4   : > { %v394_v31 = vmul.f32 %v387_v25, %v379_v30 }
  0xc5   : > { %405 = sbr.rel (!%p764_p6) target bundleno = 210 (0xd2), region = 74 }
  0xc6   : > { %397 = vst [vmem:[%s238_s7 + $0x8] sm:$0xff] %v394_v31  ;;  %v391_v33 = vpop.permute.xlu1 %390 }
  0xc7   : > { %v395_v35 = vmul.f32 %v391_v33, %v380_v32 }
  0xc8   : > { %v442_v18 = vld [vmem:[%s238_s7] sm:$0xff] (%p764_p6) }
  0xc9   : > { %398 = vst [vmem:[%s238_s7 + $0x10] sm:$0x1f] %v395_v35 }
  0xca   : > { %443 = vst [vmem:[%s409_s22] sm:$0xff] %v442_v18 }
  0xcd   : > { %v444_v28 = vld [vmem:[%s238_s7 + $0x8] sm:$0xff] }
  0xce   : > { %445 = vst [vmem:[%s409_s22 + $0x10] sm:$0xff] %v444_v28 }
  0xd0   : > { %v446_v27 = vld [vmem:[%s238_s7 + $0x10] sm:$0xff] }
  0xd1   : > { %447 = vst [vmem:[%s409_s22 + $0x20] sm:$0xff] %v446_v27 }
  0xd2 PF: > { %s13_s18 = sadd.s32 1, %s689_s18   ;;  %s864_s12 = smov %s669_s13 }
  0xd3   : > { %p10_p13 = scmp.ge.s32.totalorder %s13_s18, 6   ;;  %s865_s13 = smov %s772_s27 }
  0xd4   : > { %s866_s14 = smov %s681_s16  ;;  %s867_s15 = smov %s685_s17 }
  0xd5   : > { %s868_s16 = smov %s871_s19  ;;  %s869_s17 = smov %s875_s20 }
  0xd6   :  { %12 = sbr.rel (!%p10_p13) target bundleno = 4 (0x4), region = 146 }

</bundles_post_ra>
